<compile_context>
chip_gen: v7x
topology: tpu7x:2x2x1
jax: 0.10.0
libtpu: 0.0.40
codegen_flags: <defaults>
</compile_context>

<pallas_src>
import math

import jax
import jax.numpy as jnp
from jax.experimental import pallas as pl
from jax.experimental.pallas import tpu as pltpu


def _make_pe_kernel(tb):
    """Kernel for one batch tile of `tb` sequences.

    Refs:
      x_ref : (tb, S, K)   input tile
      w_ref : (K, N)       fc weight (transposed vs. torch layout)
      pe_ref: (S, N)       positional encoding with the fc bias folded in
      o_ref : (tb, S, N)   output tile
    """

    def kernel(x_ref, w_ref, pe_ref, o_ref):
        w = w_ref[...]
        pe = pe_ref[...]
        # Statically unrolled: each iteration is a plain 2-D MXU matmul.
        for bb in range(tb):
            acc = jnp.dot(x_ref[bb], w, preferred_element_type=jnp.float32)
            o_ref[bb] = (acc + pe).astype(o_ref.dtype)

    return kernel


def sinusoidal_pe_fixed_length(x, w, b, pe, *, max_batch_tile=8):
    """x: (B, S, D_in), w: (D_in, D_model) [= torch weight.T], b: (D_model,),
    pe: (S, D_model).  Returns Linear(x) + pe, shape (B, S, D_model)."""
    B, S, D_in = x.shape
    D_model = w.shape[1]
    assert pe.shape == (S, D_model)

    x = x.astype(jnp.float32)
    w = w.astype(jnp.float32)

    # Fold the bias into the (constant) positional-encoding table.
    pe_b = pe.astype(jnp.float32) + b.astype(jnp.float32)[None, :]

    # Batch tile: small, must divide B (sequence length is taken whole).
    TB = max(1, min(B, max_batch_tile))
    while B % TB != 0:
        TB -= 1
    grid = (B // TB,)

    itemsize = jnp.dtype(jnp.float32).itemsize
    cost = pl.CostEstimate(
        flops=int(2 * B * S * D_in * D_model),
        transcendentals=0,
        bytes_accessed=int(
            (x.size + w.size + pe_b.size + B * S * D_model) * itemsize
        ),
    )

    return pl.pallas_call(
        _make_pe_kernel(TB),
        out_shape=jax.ShapeDtypeStruct((B, S, D_model), x.dtype),
        grid=grid,
        in_specs=[
            # x tile: walks the batch-tile grid axis.
            pl.BlockSpec((TB, S, D_in), lambda i: (i, 0, 0)),
            # weight: grid-invariant -> DMA'd once, resident in VMEM.
            pl.BlockSpec((D_in, D_model), lambda i: (0, 0)),
            # pe (+bias): grid-invariant -> never replicated over batch.
            pl.BlockSpec((S, D_model), lambda i: (0, 0)),
        ],
        out_specs=pl.BlockSpec((TB, S, D_model), lambda i: (i, 0, 0)),
        compiler_params=pltpu.CompilerParams(
            dimension_semantics=("parallel",)
        ),
        cost_estimate=cost,
    )(x, w, pe_b)


def make_pe(step_back, d_model, dtype=jnp.float32):
    """Builds the fixed sinusoidal table exactly as the torch __init__ does."""
    # NOTE: matches the module spec exactly: -log(100.0) base and *10 scale.
    position = jnp.arange(step_back, dtype=jnp.float32)[:, None]          # (S, 1)
    div_term = jnp.exp(
        jnp.arange(0, d_model, 2, dtype=jnp.float32) * (-math.log(100.0) / d_model)
    )                                                                      # (D/2,)
    pe = jnp.zeros((step_back, d_model), dtype=jnp.float32)
    pe = pe.at[:, 0::2].set(jnp.sin(position * div_term) * 10.0)
    pe = pe.at[:, 1::2].set(jnp.cos(position * div_term) * 10.0)
    return pe.astype(dtype)


if __name__ == "__main__":
    # Small shapes consistent with the module: batch=2, step_back=4,
    # input_dim=8, d_model=32.
    batch, step_back, input_dim, d_model = 2, 4, 8, 32

    key = jax.random.PRNGKey(0)
    kx, kw, kb = jax.random.split(key, 3)

    x = jax.random.normal(kx, (batch, step_back, input_dim), dtype=jnp.float32)

    # Deterministic parameter init (matches nn.Linear's uniform range).
    bound = 1.0 / math.sqrt(input_dim)
    w = jax.random.uniform(kw, (input_dim, d_model), jnp.float32, -bound, bound)
    b = jax.random.uniform(kb, (d_model,), jnp.float32, -bound, bound)

    pe = make_pe(step_back, d_model)

    out = sinusoidal_pe_fixed_length(x, w, b, pe)
    out = jax.block_until_ready(out)

    # Pure-JAX reference for correctness.
    ref = jnp.einsum("bsk,kn->bsn", x, w) + b[None, None, :] + pe[None, :, :]
    assert out.shape == (batch, step_back, d_model)
    assert jnp.allclose(out, ref, atol=1e-5, rtol=1e-5)

    print("KERNEL_OK")
</pallas_src>

<mosaic_0001>
module attributes {stable_mosaic.version = 11 : i64} {
  func.func @kernel(%arg0: i32, %arg1: memref<2x4x8xf32, #tpu.memory_space<vmem>>, %arg2: memref<8x32xf32, #tpu.memory_space<vmem>>, %arg3: memref<4x32xf32, #tpu.memory_space<vmem>>, %arg4: memref<2x4x32xf32, #tpu.memory_space<vmem>>) attributes {dimension_semantics = [#tpu.dimension_semantics<parallel>], iteration_bounds = array<i64: 1>, scalar_prefetch = 0 : i64, scratch_operands = 0 : i64, tpu.core_type = #tpu.core_type<tc>, window_params = [{transform_indices = @transform_0, window_bounds = array<i64: 2, 4, 8>}, {pipeline_mode = #tpu.pipeline_mode<synchronous>, transform_indices = @transform_1, window_bounds = array<i64: 8, 32>}, {pipeline_mode = #tpu.pipeline_mode<synchronous>, transform_indices = @transform_2, window_bounds = array<i64: 4, 32>}, {transform_indices = @transform_3, window_bounds = array<i64: 2, 4, 32>}]} {
    %c0 = arith.constant 0 : index
    %c0_0 = arith.constant 0 : index
    %0 = vector.load %arg2[%c0, %c0_0] : memref<8x32xf32, #tpu.memory_space<vmem>>, vector<8x32xf32>
    %c0_1 = arith.constant 0 : index
    %c0_2 = arith.constant 0 : index
    %1 = vector.load %arg3[%c0_1, %c0_2] : memref<4x32xf32, #tpu.memory_space<vmem>>, vector<4x32xf32>
    %c0_3 = arith.constant 0 : index
    %c0_4 = arith.constant 0 : index
    %c0_5 = arith.constant 0 : index
    %2 = vector.load %arg1[%c0_3, %c0_4, %c0_5] : memref<2x4x8xf32, #tpu.memory_space<vmem>>, vector<1x4x8xf32>
    %3 = vector.shape_cast %2 : vector<1x4x8xf32> to vector<4x8xf32>
    %cst = arith.constant dense<0.000000e+00> : vector<4x32xf32>
    %4 = tpu.matmul %3, %0, %cst {dimension_numbers = #tpu.dot_dimension_numbers<[1], [0], [0], [1], [0, 0, 1, 1], [], []>} : vector<4x8xf32>, vector<8x32xf32>, vector<4x32xf32> -> vector<4x32xf32>
    %5 = arith.addf %4, %1 : vector<4x32xf32>
    %c0_6 = arith.constant 0 : index
    %c0_7 = arith.constant 0 : index
    %c0_8 = arith.constant 0 : index
    %6 = vector.load %arg4[%c0_6, %c0_7, %c0_8] : memref<2x4x32xf32, #tpu.memory_space<vmem>>, vector<1x4x32xf32>
    %7 = vector.shape_cast %6 : vector<1x4x32xf32> to vector<4x32xf32>
    %8 = vector.shape_cast %5 : vector<4x32xf32> to vector<1x4x32xf32>
    tpu.vector_store %arg4[%c0_6, %c0_7, %c0_8], %8 {strides = array<i32>} : memref<2x4x32xf32, #tpu.memory_space<vmem>>, vector<1x4x32xf32>,
    %c1 = arith.constant 1 : index
    %c0_9 = arith.constant 0 : index
    %c0_10 = arith.constant 0 : index
    %9 = vector.load %arg1[%c1, %c0_9, %c0_10] : memref<2x4x8xf32, #tpu.memory_space<vmem>>, vector<1x4x8xf32>
    %10 = vector.shape_cast %9 : vector<1x4x8xf32> to vector<4x8xf32>
    %cst_11 = arith.constant dense<0.000000e+00> : vector<4x32xf32>
    %11 = tpu.matmul %10, %0, %cst_11 {dimension_numbers = #tpu.dot_dimension_numbers<[1], [0], [0], [1], [0, 0, 1, 1], [], []>} : vector<4x8xf32>, vector<8x32xf32>, vector<4x32xf32> -> vector<4x32xf32>
    %12 = arith.addf %11, %1 : vector<4x32xf32>
    %c1_12 = arith.constant 1 : index
    %c0_13 = arith.constant 0 : index
    %c0_14 = arith.constant 0 : index
    %13 = vector.load %arg4[%c1_12, %c0_13, %c0_14] : memref<2x4x32xf32, #tpu.memory_space<vmem>>, vector<1x4x32xf32>
    %14 = vector.shape_cast %13 : vector<1x4x32xf32> to vector<4x32xf32>
    %15 = vector.shape_cast %12 : vector<4x32xf32> to vector<1x4x32xf32>
    tpu.vector_store %arg4[%c1_12, %c0_13, %c0_14], %15 {strides = array<i32>} : memref<2x4x32xf32, #tpu.memory_space<vmem>>, vector<1x4x32xf32>,
    return
  }
  func.func @transform_0(%arg0: i32) -> (i32, i32, i32) {
    %c0_i32 = arith.constant 0 : i32
    %c0_i32_0 = arith.constant 0 : i32
    %c0_i32_1 = arith.constant 0 : i32
    return %arg0, %c0_i32, %c0_i32_0 : i32, i32, i32
  }
  func.func @transform_1(%arg0: i32) -> (i32, i32) {
    %c0_i32 = arith.constant 0 : i32
    %c0_i32_0 = arith.constant 0 : i32
    %c0_i32_1 = arith.constant 0 : i32
    return %c0_i32, %c0_i32_0 : i32, i32
  }
  func.func @transform_2(%arg0: i32) -> (i32, i32) {
    %c0_i32 = arith.constant 0 : i32
    %c0_i32_0 = arith.constant 0 : i32
    %c0_i32_1 = arith.constant 0 : i32
    return %c0_i32, %c0_i32_0 : i32, i32
  }
  func.func @transform_3(%arg0: i32) -> (i32, i32, i32) {
    %c0_i32 = arith.constant 0 : i32
    %c0_i32_0 = arith.constant 0 : i32
    %c0_i32_1 = arith.constant 0 : i32
    return %arg0, %c0_i32, %c0_i32_0 : i32, i32, i32
  }
}

</mosaic_0001>

<bundles_post_ra>
// kernel: tpu_custom_call.1
= control target key start
LH: loop header
LB: loop body
LE: loop exit
PB: predicated region body
PF: predicated region fallthrough
CT: control target
= control target key end

     0   :  { %8 = vsyncpa [#allocation3], 0  ;;  %s382_s0 = inlined_call_operand.hbm [shape: f32[2,4,8], index: 0, kind: input, shape index: {}]   ;;  %s383_s1 = inlined_call_operand.hbm [shape: f32[8,32], index: 1, kind: input, shape index: {}]   ;;  %s384_s2 = inlined_call_operand.vmem [shape: f32[4,32], index: 2, kind: input, shape index: {}]   ;;  %s385_s3 = inlined_call_operand.hbm [shape: f32[2,4,32], index: 3, kind: output, shape index: {}]  }
   0x1   :  { %9 = vsyncpa [#allocation6], 0 }
   0x2   :  { %10 = vsyncpa [#allocation4], 0  ;;  %s310_s12 = smov [#allocation2]   ;;  %s238_s16 = scalar_lea.hbm %s382_s0, 128 }
   0x3   :  { %s16_s13 = sshll.u32 %s310_s12, 4  ;;  %p239_p0 = scmp.ne.s32.totalorder %s382_s0, %s238_s16  ;;  %s17_s13 = int_to_ptr.vmem [resolvable:$true] %s16_s13 }
   0x4   :  { %p242_p1 = scmp.lt.u32.totalorder %s238_s16, %s382_s0 }
   0x6   :  { %p244_p2 = pnand %p242_p1, %p239_p0 }
   0x8   :  { %247 = shalt.err (!%p244_p2)
}
   0x9   :  { %s248_s21 = scalar_lea.vmem %s17_s13, 128  ;;  %p253_p4 = scmp.lt.s32.totalorder %s17_s13, %s17_s13 }
   0xa   :  { %p249_p3 = scmp.ne.s32.totalorder %s17_s13, %s248_s21  ;;  %p254_p5 = scmp.lt.s32.totalorder %s248_s21, %s248_s21 }
   0xc   :  { %p255_p6 = por %p254_p5, %p253_p4 }
   0xe   :  { %p256_p7 = pnand %p255_p6, %p249_p3 }
  0x10   :  { %259 = shalt.err (!%p256_p7)
}
  0x11   :  { %s311_s22 = smov 64   ;;  %s312_s23 = smov 4  }
  0x12   :  { %22 = dma.hbm_to_vmem [thread:$0]  %s382_s0, 128, %s17_s13, [#allocation3], %s311_s22, %s311_s22, %s312_s23  }
  0x13   :  { %s313_s26 = smov [#allocation5]   ;;  %s260_s30 = scalar_lea.hbm %s383_s1, 128 }
  0x14   :  { %s29_s27 = sshll.u32 %s313_s26, 4  ;;  %p261_p8 = scmp.ne.s32.totalorder %s383_s1, %s260_s30  ;;  %s30_s27 = int_to_ptr.vmem [resolvable:$true] %s29_s27 }
  0x15   :  { %p264_p9 = scmp.lt.u32.totalorder %s260_s30, %s383_s1 }
  0x17   :  { %p266_p10 = pnand %p264_p9, %p261_p8 }
  0x19   :  { %269 = shalt.err (!%p266_p10)
}
  0x1a   :  { %s270_s8 = scalar_lea.vmem %s30_s27, 128  ;;  %p275_p12 = scmp.lt.s32.totalorder %s30_s27, %s30_s27 }
  0x1b   :  { %p271_p11 = scmp.ne.s32.totalorder %s30_s27, %s270_s8  ;;  %p276_p13 = scmp.lt.s32.totalorder %s270_s8, %s270_s8 }
  0x1d   :  { %p277_p0 = por %p276_p13, %p275_p12 }
  0x1f   :  { %p278_p1 = pnand %p277_p0, %p271_p11 }
  0x21   :  { %281 = shalt.err (!%p278_p1)
}
  0x22   :  { %32 = dma.hbm_to_vmem [thread:$0]  %s383_s1, 128, %s30_s27, [#allocation6]  }
  0x23   :  { %304 = dma.done.wait [#allocation3], 128  }
  0x24   :  { %305 = vsyncadd [#allocation3], 4294967168 }
  0x25   :  { %306 = dma.done.wait [#allocation6], 128  }
  0x26   :  { %307 = vsyncadd [#allocation6], 4294967168  ;;  %v314_v0 = vmov 0.0   ;;  %vm315_vm0 = vmmov 0   ;;  %vm44_vm1 = vcmask 64512   ;;  %v41_v1 = vld [vmem:[#allocation5] sm:$0xff] }
  0x27   :  { %221 = vmatprep.subr.mxu0 %v314_v0  ;;  %226 = vmatprep.subr.mxu1 %v314_v0  ;;  %v43_v2 = vld [vmem:[#allocation2] sm:$0xf]  ;;  %v121_v3 = vld [vmem:[#allocation2 + $0x4] sm:$0xf]  ;;  %s316_s11 = smov [#allocation7]   ;;  %vm118_vm2 = vcmask 257024  }
  0x28   :  { %223 = vmatprep.mubr.msk.f32.mxu0 %vm315_vm0, %v314_v0  ;;  %228 = vmatprep.mubr.msk.f32.mxu1 %vm315_vm0, %v314_v0  ;;  %v42_v4 = vld [vmem:[%s384_s2] sm:$0xf]  ;;  %s202_s12 = sshll.u32 %s316_s11, 4  ;;  %s203_s12 = int_to_ptr.vmem [resolvable:$true] %s202_s12 }
  0x29   :  { %222 = vmatpush3.msra.mxu0 %v41_v1  ;;  %227 = vmatpush3.msra.mxu1 %v41_v1  ;;  %s282_s13 = scalar_lea.vmem %s203_s12, 128  ;;  %p287_p3 = scmp.lt.s32.totalorder %s203_s12, %s203_s12 }
  0x2a   :  { %224 = vmatmul.mubr.msk.f32.vlgmr.msra.gmra.mrb[0].mxu0 %vm44_vm1, %v43_v2  ;;  %229 = vmatmul.mubr.msk.f32.vlgmr.msra.gmra.mrb[0].mxu1 %vm44_vm1, %v121_v3  ;;  %p283_p2 = scmp.ne.s32.totalorder %s203_s12, %s282_s13  ;;  %p288_p4 = scmp.lt.s32.totalorder %s282_s13, %s282_s13 }
  0x2c   :  { %p289_p5 = por %p288_p4, %p287_p3 }
  0x2e   :  { %p290_p6 = pnand %p289_p5, %p283_p2 }
  0xfd   :  { %v114_v5 = vpop.f32.mrb[0].mxu0  ;;  %v191_v6 = vpop.f32.mrb[0].mxu1 }
  0xfe   :  { %v115_v7 = vadd.f32 %v114_v5, %v42_v4  ;;  %v192_v8 = vadd.f32 %v191_v6, %v42_v4  ;;  %v225_v9 = vpop.f32.mrb[1].mxu0  ;;  %v230_v10 = vpop.f32.mrb[1].mxu1 }
 0x100   :  { %119 = vst.msk [vmem:[#allocation7] sm:$0xf] %vm118_vm2, %v115_v7  ;;  %196 = vst.msk [vmem:[#allocation7 + $0x4] sm:$0xf] %vm118_vm2, %v192_v8 }
 0x101   :  { %293 = shalt.err (!%p290_p6)
}
 0x102   :  { %s294_s15 = scalar_lea.hbm %s385_s3, 128 }
 0x103   :  { %p295_p7 = scmp.ne.s32.totalorder %s385_s3, %s294_s15  ;;  %p298_p8 = scmp.lt.u32.totalorder %s294_s15, %s385_s3 }
 0x105   :  { %p300_p9 = pnand %p298_p8, %p295_p7 }
 0x107   :  { %303 = shalt.err (!%p300_p9)
}
 0x108   :  { %208 = dma.vmem_to_hbm [thread:$0]  %s203_s12, 128, %s385_s3, [#allocation4], %s311_s22, %s311_s22, %s312_s23  }
 0x109   :  { %308 = dma.done.wait [#allocation4], 128  }
 0x10a   :  { %309 = vsyncadd [#allocation4], 4294967168 }
 0x10b   :  { %212 = vsyncpa [#allocation3], 1 }
 0x10c   :  { %213 = vsyncpa [#allocation6], 1 }
 0x10d   :  { %214 = vsyncpa [#allocation4], 1 }

</bundles_post_ra>
